<compile_context>
chip_gen: v7x
topology: tpu7x:2x2x1
jax: 0.10.0
libtpu: 0.0.40
codegen_flags: <defaults>
</compile_context>

<pallas_src>
import functools

import jax
import jax.numpy as jnp
from jax.experimental import pallas as pl
from jax.experimental.pallas import tpu as pltpu


def _attention_cnn_kernel(x_ref, w_ref, b_ref, clu_ref, emb_ref,
                          feat_ref, score_ref, *, L):
    # x_ref:     (B*L + pad, C_in)      all posts, batch folded into rows
    # w_ref:     (K, C_in, C_out)       conv weight (shared)
    # b_ref:     (1, C_out)             conv bias
    # clu_ref:   (B, 1) int32           user cluster ids
    # emb_ref:   (cluster_size, C_out)  cluster-attention embedding table
    # feat_ref:  (B, C_out)             output post features
    # score_ref: (B, L_out)             output softmax attention weights
    K, C_in, C_out = w_ref.shape
    B, L_out = score_ref.shape
    BL = B * L

    x = x_ref[...]                                     # (B*L + pad, C_in)

    # Conv1d as K shifted matmuls with the batch folded into the MXU M dim.
    # Rows r with (r % L) >= L_out are garbage (windows crossing into the
    # next post / zero padding) and are masked out in the softmax below.
    acc = jnp.dot(x[0:BL, :], w_ref[0], preferred_element_type=jnp.float32)
    for k in range(1, K):                              # K small & static -> unrolled
        acc = acc + jnp.dot(x[k:k + BL, :], w_ref[k],
                            preferred_element_type=jnp.float32)
    conv = jnp.maximum(acc + b_ref[...], 0.0)          # ReLU(conv): (B*L, C_out)
    conv3 = conv.reshape(B, L, C_out)                  # tile-aligned split (L % 8 == 0)

    # In-kernel embedding "gather": one-hot(clusters) @ table on the MXU.
    cs = emb_ref.shape[0]
    onehot = (jax.lax.broadcasted_iota(jnp.int32, (B, cs), 1)
              == clu_ref[...]).astype(jnp.float32)     # (B, cluster_size)
    attn = jnp.dot(onehot, emb_ref[...],
                   preferred_element_type=jnp.float32)  # (B, C_out)

    # attn_scores[b, l] = <conv[b, l, :], attn[b, :]>, lane-oriented (L on lanes).
    scores = jnp.sum(conv3 * attn[:, None, :], axis=-1)           # (B, L)

    # Masked, numerically stable softmax over the length dimension (dim=1).
    pos = jax.lax.broadcasted_iota(jnp.int32, (B, L), 1)
    valid = pos < L_out
    scores = jnp.where(valid, scores, -1e30)
    m = jnp.max(scores, axis=-1, keepdims=True)
    e = jnp.where(valid, jnp.exp(scores - m), 0.0)
    # Exact divide kept on purpose (approx reciprocal would loosen agreement
    # with the reference softmax at the 1e-5 level).
    p = e / jnp.sum(e, axis=-1, keepdims=True)                    # (B, L)

    # post_feature[b, c] = sum_l p[b, l] * conv[b, l, c]
    feat = jnp.sum(conv3 * p[:, :, None], axis=1)                 # (B, C_out)

    feat_ref[...] = feat.astype(feat_ref.dtype)
    score_ref[...] = p[:, :L_out].astype(score_ref.dtype)


def attention_cnn_block(x_nlc, clusters, conv_w, conv_b, emb):
    """x_nlc: (B, L, C_in) f32, clusters: (B,) i32,
    conv_w: (C_out, C_in, K), conv_b: (C_out,), emb: (cluster_size, C_out).
    Returns (post_feature (B, C_out, 1), scaled_attn_scores (B, L_out, 1))."""
    B, L, C_in = x_nlc.shape
    C_out, _, K = conv_w.shape
    L_out = L - K + 1
    cluster_size = emb.shape[0]

    # Fold the batch into the row (sublane / MXU-M) dimension; pad with zero
    # rows so the K-1 shifted conv windows of the last post stay in bounds.
    pad = ((K - 1 + 7) // 8) * 8
    x_flat = jnp.pad(x_nlc.reshape(B * L, C_in), ((0, pad), (0, 0)))

    w_packed = jnp.transpose(conv_w, (2, 1, 0))        # (K, C_in, C_out)
    b_packed = conv_b.reshape(1, C_out)
    clu = clusters.astype(jnp.int32).reshape(B, 1)

    kernel = functools.partial(_attention_cnn_kernel, L=L)

    feat, scores = pl.pallas_call(
        kernel,
        grid=(1,),                                     # whole batch per step
        in_specs=[
            pl.BlockSpec((B * L + pad, C_in), lambda g: (0, 0)),
            pl.BlockSpec((K, C_in, C_out), lambda g: (0, 0, 0)),
            pl.BlockSpec((1, C_out), lambda g: (0, 0)),
            pl.BlockSpec((B, 1), lambda g: (0, 0)),
            pl.BlockSpec((cluster_size, C_out), lambda g: (0, 0)),
        ],
        out_specs=[
            pl.BlockSpec((B, C_out), lambda g: (0, 0)),
            pl.BlockSpec((B, L_out), lambda g: (0, 0)),
        ],
        out_shape=[
            jax.ShapeDtypeStruct((B, C_out), jnp.float32),
            jax.ShapeDtypeStruct((B, L_out), jnp.float32),
        ],
        compiler_params=pltpu.CompilerParams(dimension_semantics=("arbitrary",)),
    )(x_flat, w_packed, b_packed, clu, emb)

    post_feature = feat[:, :, None]                    # (B, C_out, 1)
    scaled_attn_scores = scores[:, :, None]            # (B, L_out, 1)
    return post_feature, scaled_attn_scores


def reference(x_nlc, clusters, conv_w, conv_b, emb):
    """Pure-JAX reference of the PyTorch forward (same layouts as wrapper)."""
    B, L, C_in = x_nlc.shape
    C_out, _, K = conv_w.shape
    L_out = L - K + 1
    conv = jnp.zeros((B, L_out, C_out), jnp.float32)
    for k in range(K):
        conv = conv + jnp.einsum('blc,oc->blo',
                                 x_nlc[:, k:k + L_out, :], conv_w[:, :, k])
    conv = jnp.maximum(conv + conv_b[None, None, :], 0.0)
    attn = emb[clusters]                               # (B, C_out)
    s = jnp.einsum('blo,bo->bl', conv, attn)           # (B, L_out)
    p = jax.nn.softmax(s, axis=1)
    feat = jnp.einsum('blo,bl->bo', conv, p)           # (B, C_out)
    return feat[:, :, None], p[:, :, None]


if __name__ == "__main__":
    # Module hyper-params (small, deterministic)
    B = 2
    input_size = 32       # in_channels of Conv1d
    kernel_size = 3
    num_channels = 16     # out_channels of Conv1d
    max_post_len = 16
    cluster_size = 8

    key = jax.random.PRNGKey(0)
    k_x, k_c, k_w, k_b, k_e = jax.random.split(key, 5)

    # Inputs (kernel layout (B, L, C_in); PyTorch would be (B, C_in, L))
    x_nlc = jax.random.normal(k_x, (B, max_post_len, input_size), jnp.float32)
    clusters = jax.random.randint(k_c, (B,), 0, cluster_size, jnp.int32)

    # Deterministic synthetic parameters (shapes per nn.Conv1d / nn.Embedding)
    conv_w = 0.1 * jax.random.normal(
        k_w, (num_channels, input_size, kernel_size), jnp.float32)
    conv_b = 0.1 * jax.random.normal(k_b, (num_channels,), jnp.float32)
    emb = jax.random.normal(k_e, (cluster_size, num_channels), jnp.float32)

    post_feature, attn_scores = attention_cnn_block(
        x_nlc, clusters, conv_w, conv_b, emb)
    post_feature = jax.block_until_ready(post_feature)
    attn_scores = jax.block_until_ready(attn_scores)

    ref_feat, ref_scores = reference(x_nlc, clusters, conv_w, conv_b, emb)

    assert post_feature.shape == (B, num_channels, 1)
    assert attn_scores.shape == (B, max_post_len - kernel_size + 1, 1)
    assert jnp.allclose(post_feature, ref_feat, atol=1e-4, rtol=1e-4)
    assert jnp.allclose(attn_scores, ref_scores, atol=1e-4, rtol=1e-4)

    print("KERNEL_OK")
</pallas_src>

<mosaic_0001>
module attributes {stable_mosaic.version = 11 : i64} {
  func.func @_attention_cnn_kernel(%arg0: i32, %arg1: memref<40x32xf32, #tpu.memory_space<vmem>>, %arg2: memref<3x32x16xf32, #tpu.memory_space<vmem>>, %arg3: memref<1x16xf32, #tpu.memory_space<vmem>>, %arg4: memref<2x1xi32, #tpu.memory_space<vmem>>, %arg5: memref<8x16xf32, #tpu.memory_space<vmem>>, %arg6: memref<2x16xf32, #tpu.memory_space<vmem>>, %arg7: memref<2x14xf32, #tpu.memory_space<vmem>>) attributes {dimension_semantics = [#tpu.dimension_semantics<arbitrary>], iteration_bounds = array<i64: 1>, scalar_prefetch = 0 : i64, scratch_operands = 0 : i64, tpu.core_type = #tpu.core_type<tc>, window_params = [{pipeline_mode = #tpu.pipeline_mode<synchronous>, transform_indices = @transform_0, window_bounds = array<i64: 40, 32>}, {pipeline_mode = #tpu.pipeline_mode<synchronous>, transform_indices = @transform_1, window_bounds = array<i64: 3, 32, 16>}, {pipeline_mode = #tpu.pipeline_mode<synchronous>, transform_indices = @transform_2, window_bounds = array<i64: 1, 16>}, {pipeline_mode = #tpu.pipeline_mode<synchronous>, transform_indices = @transform_3, window_bounds = array<i64: 2, 1>}, {pipeline_mode = #tpu.pipeline_mode<synchronous>, transform_indices = @transform_4, window_bounds = array<i64: 8, 16>}, {pipeline_mode = #tpu.pipeline_mode<synchronous>, transform_indices = @transform_5, window_bounds = array<i64: 2, 16>}, {pipeline_mode = #tpu.pipeline_mode<synchronous>, transform_indices = @transform_6, window_bounds = array<i64: 2, 14>}]} {
    %c0 = arith.constant 0 : index
    %c0_0 = arith.constant 0 : index
    %0 = vector.load %arg1[%c0, %c0_0] : memref<40x32xf32, #tpu.memory_space<vmem>>, vector<40x32xf32>
    %1 = vector.extract_strided_slice %0 {offsets = [0, 0], sizes = [32, 32], strides = [1, 1]} : vector<40x32xf32> to vector<32x32xf32>
    %c0_1 = arith.constant 0 : index
    %c0_2 = arith.constant 0 : index
    %c0_3 = arith.constant 0 : index
    %2 = vector.load %arg2[%c0_1, %c0_2, %c0_3] : memref<3x32x16xf32, #tpu.memory_space<vmem>>, vector<1x32x16xf32>
    %3 = vector.shape_cast %2 : vector<1x32x16xf32> to vector<32x16xf32>
    %cst = arith.constant dense<0.000000e+00> : vector<32x16xf32>
    %4 = tpu.matmul %1, %3, %cst {dimension_numbers = #tpu.dot_dimension_numbers<[1], [0], [0], [1], [0, 0, 1, 1], [], []>} : vector<32x32xf32>, vector<32x16xf32>, vector<32x16xf32> -> vector<32x16xf32>
    %5 = vector.extract_strided_slice %0 {offsets = [1, 0], sizes = [32, 32], strides = [1, 1]} : vector<40x32xf32> to vector<32x32xf32>
    %c1 = arith.constant 1 : index
    %c0_4 = arith.constant 0 : index
    %c0_5 = arith.constant 0 : index
    %6 = vector.load %arg2[%c1, %c0_4, %c0_5] : memref<3x32x16xf32, #tpu.memory_space<vmem>>, vector<1x32x16xf32>
    %7 = vector.shape_cast %6 : vector<1x32x16xf32> to vector<32x16xf32>
    %cst_6 = arith.constant dense<0.000000e+00> : vector<32x16xf32>
    %8 = tpu.matmul %5, %7, %cst_6 {dimension_numbers = #tpu.dot_dimension_numbers<[1], [0], [0], [1], [0, 0, 1, 1], [], []>} : vector<32x32xf32>, vector<32x16xf32>, vector<32x16xf32> -> vector<32x16xf32>
    %9 = arith.addf %4, %8 : vector<32x16xf32>
    %10 = vector.extract_strided_slice %0 {offsets = [2, 0], sizes = [32, 32], strides = [1, 1]} : vector<40x32xf32> to vector<32x32xf32>
    %c2 = arith.constant 2 : index
    %c0_7 = arith.constant 0 : index
    %c0_8 = arith.constant 0 : index
    %11 = vector.load %arg2[%c2, %c0_7, %c0_8] : memref<3x32x16xf32, #tpu.memory_space<vmem>>, vector<1x32x16xf32>
    %12 = vector.shape_cast %11 : vector<1x32x16xf32> to vector<32x16xf32>
    %cst_9 = arith.constant dense<0.000000e+00> : vector<32x16xf32>
    %13 = tpu.matmul %10, %12, %cst_9 {dimension_numbers = #tpu.dot_dimension_numbers<[1], [0], [0], [1], [0, 0, 1, 1], [], []>} : vector<32x32xf32>, vector<32x16xf32>, vector<32x16xf32> -> vector<32x16xf32>
    %14 = arith.addf %9, %13 : vector<32x16xf32>
    %c0_10 = arith.constant 0 : index
    %c0_11 = arith.constant 0 : index
    %15 = vector.load %arg3[%c0_10, %c0_11] : memref<1x16xf32, #tpu.memory_space<vmem>>, vector<1x16xf32>
    %16 = vector.broadcast %15 : vector<1x16xf32> to vector<32x16xf32>
    %17 = arith.addf %14, %16 : vector<32x16xf32>
    %cst_12 = arith.constant 0.000000e+00 : f32
    %18 = vector.broadcast %cst_12 : f32 to vector<32x16xf32>
    %19 = arith.maximumf %17, %18 : vector<32x16xf32>
    %20 = vector.shape_cast %19 : vector<32x16xf32> to vector<2x16x16xf32>
    %21 = tpu.iota {dimensions = array<i32: 1>} : vector<2x8xi32>
    %c0_13 = arith.constant 0 : index
    %c0_14 = arith.constant 0 : index
    %22 = vector.load %arg4[%c0_13, %c0_14] : memref<2x1xi32, #tpu.memory_space<vmem>>, vector<2x1xi32>
    %23 = vector.broadcast %22 : vector<2x1xi32> to vector<2x8xi32>
    %24 = arith.cmpi eq, %21, %23 : vector<2x8xi32>
    %25 = arith.extui %24 : vector<2x8xi1> to vector<2x8xi32>
    %26 = arith.sitofp %25 : vector<2x8xi32> to vector<2x8xf32>
    %c0_15 = arith.constant 0 : index
    %c0_16 = arith.constant 0 : index
    %27 = vector.load %arg5[%c0_15, %c0_16] : memref<8x16xf32, #tpu.memory_space<vmem>>, vector<8x16xf32>
    %cst_17 = arith.constant dense<0.000000e+00> : vector<2x16xf32>
    %28 = tpu.matmul %26, %27, %cst_17 {dimension_numbers = #tpu.dot_dimension_numbers<[1], [0], [0], [1], [0, 0, 1, 1], [], []>} : vector<2x8xf32>, vector<8x16xf32>, vector<2x16xf32> -> vector<2x16xf32>
    %29 = vector.shape_cast %28 : vector<2x16xf32> to vector<2x1x16xf32>
    %30 = vector.broadcast %29 : vector<2x1x16xf32> to vector<2x16x16xf32>
    %31 = arith.mulf %20, %30 : vector<2x16x16xf32>
    %cst_18 = arith.constant dense<0.000000e+00> : vector<2x16xf32>
    %32 = vector.multi_reduction <add>, %31, %cst_18 [2] : vector<2x16x16xf32> to vector<2x16xf32>
    %33 = tpu.iota {dimensions = array<i32: 1>} : vector<2x16xi32>
    %c14_i32 = arith.constant 14 : i32
    %34 = vector.broadcast %c14_i32 : i32 to vector<2x16xi32>
    %35 = arith.cmpi slt, %33, %34 : vector<2x16xi32>
    %cst_19 = arith.constant -1.000000e+30 : f32
    %36 = vector.broadcast %cst_19 : f32 to vector<2x16xf32>
    %37 = arith.select %35, %32, %36 : vector<2x16xi1>, vector<2x16xf32>
    %cst_20 = arith.constant dense<0xFF800000> : vector<2xf32>
    %38 = vector.multi_reduction <maximumf>, %37, %cst_20 [1] : vector<2x16xf32> to vector<2xf32>
    %39 = vector.shape_cast %38 : vector<2xf32> to vector<2x1xf32>
    %40 = vector.broadcast %39 : vector<2x1xf32> to vector<2x16xf32>
    %41 = arith.subf %37, %40 : vector<2x16xf32>
    %42 = math.exp %41 : vector<2x16xf32>
    %cst_21 = arith.constant 0.000000e+00 : f32
    %43 = vector.broadcast %cst_21 : f32 to vector<2x16xf32>
    %44 = arith.select %35, %42, %43 : vector<2x16xi1>, vector<2x16xf32>
    %cst_22 = arith.constant dense<0.000000e+00> : vector<2xf32>
    %45 = vector.multi_reduction <add>, %44, %cst_22 [1] : vector<2x16xf32> to vector<2xf32>
    %46 = vector.shape_cast %45 : vector<2xf32> to vector<2x1xf32>
    %47 = vector.broadcast %46 : vector<2x1xf32> to vector<2x16xf32>
    %48 = arith.divf %44, %47 : vector<2x16xf32>
    %49 = vector.shape_cast %48 : vector<2x16xf32> to vector<2x16x1xf32>
    %50 = vector.broadcast %49 : vector<2x16x1xf32> to vector<2x16x16xf32>
    %51 = arith.mulf %20, %50 : vector<2x16x16xf32>
    %cst_23 = arith.constant dense<0.000000e+00> : vector<2x16xf32>
    %52 = vector.multi_reduction <add>, %51, %cst_23 [1] : vector<2x16x16xf32> to vector<2x16xf32>
    %c0_24 = arith.constant 0 : index
    %c0_25 = arith.constant 0 : index
    %53 = vector.load %arg6[%c0_24, %c0_25] : memref<2x16xf32, #tpu.memory_space<vmem>>, vector<2x16xf32>
    tpu.vector_store %arg6[%c0_24, %c0_25], %52 {strides = array<i32>} : memref<2x16xf32, #tpu.memory_space<vmem>>, vector<2x16xf32>,
    %54 = vector.extract_strided_slice %48 {offsets = [0, 0], sizes = [2, 14], strides = [1, 1]} : vector<2x16xf32> to vector<2x14xf32>
    %c0_26 = arith.constant 0 : index
    %c0_27 = arith.constant 0 : index
    %55 = vector.load %arg7[%c0_26, %c0_27] : memref<2x14xf32, #tpu.memory_space<vmem>>, vector<2x14xf32>
    tpu.vector_store %arg7[%c0_26, %c0_27], %54 {strides = array<i32>} : memref<2x14xf32, #tpu.memory_space<vmem>>, vector<2x14xf32>,
    return
  }
  func.func @transform_0(%arg0: i32) -> (i32, i32) {
    %c0_i32 = arith.constant 0 : i32
    %c0_i32_0 = arith.constant 0 : i32
    %c0_i32_1 = arith.constant 0 : i32
    return %c0_i32, %c0_i32_0 : i32, i32
  }
  func.func @transform_1(%arg0: i32) -> (i32, i32, i32) {
    %c0_i32 = arith.constant 0 : i32
    %c0_i32_0 = arith.constant 0 : i32
    %c0_i32_1 = arith.constant 0 : i32
    %c0_i32_2 = arith.constant 0 : i32
    return %c0_i32, %c0_i32_0, %c0_i32_1 : i32, i32, i32
  }
  func.func @transform_2(%arg0: i32) -> (i32, i32) {
    %c0_i32 = arith.constant 0 : i32
    %c0_i32_0 = arith.constant 0 : i32
    %c0_i32_1 = arith.constant 0 : i32
    return %c0_i32, %c0_i32_0 : i32, i32
  }
  func.func @transform_3(%arg0: i32) -> (i32, i32) {
    %c0_i32 = arith.constant 0 : i32
    %c0_i32_0 = arith.constant 0 : i32
    %c0_i32_1 = arith.constant 0 : i32
    return %c0_i32, %c0_i32_0 : i32, i32
  }
  func.func @transform_4(%arg0: i32) -> (i32, i32) {
    %c0_i32 = arith.constant 0 : i32
    %c0_i32_0 = arith.constant 0 : i32
    %c0_i32_1 = arith.constant 0 : i32
    return %c0_i32, %c0_i32_0 : i32, i32
  }
  func.func @transform_5(%arg0: i32) -> (i32, i32) {
    %c0_i32 = arith.constant 0 : i32
    %c0_i32_0 = arith.constant 0 : i32
    %c0_i32_1 = arith.constant 0 : i32
    return %c0_i32, %c0_i32_0 : i32, i32
  }
  func.func @transform_6(%arg0: i32) -> (i32, i32) {
    %c0_i32 = arith.constant 0 : i32
    %c0_i32_0 = arith.constant 0 : i32
    %c0_i32_1 = arith.constant 0 : i32
    return %c0_i32, %c0_i32_0 : i32, i32
  }
}

</mosaic_0001>

<bundles_post_ra>
// kernel: tpu_custom_call.1
= control target key start
LH: loop header
LB: loop body
LE: loop exit
PB: predicated region body
PF: predicated region fallthrough
CT: control target
= control target key end

     0   :  { %12 = vsyncpa [#allocation3], 0  ;;  %vm53_vm0 = vcmask 261120   ;;  %v809_v3 = vmov 0   ;;  %vm43_vm1 = vcmask 1046528   ;;  %s1008_s0 = inlined_call_operand.vmem [shape: f32[40,32], index: 0, kind: input, shape index: {}]   ;;  %s1009_s1 = inlined_call_operand.vmem [shape: f32[3,32,16], index: 1, kind: input, shape index: {}]   ;;  %s1010_s2 = inlined_call_operand.vmem [shape: f32[1,16], index: 2, kind: input, shape index: {}]   ;;  %s1011_s3 = inlined_call_operand.vmem [shape: s32[2,1], index: 3, kind: input, shape index: {}]   ;;  %s1012_s4 = inlined_call_operand.vmem [shape: f32[8,16], index: 4, kind: input, shape index: {}]   ;;  %s1013_s5 = inlined_call_operand.hbm [shape: f32[2,16], index: 5, kind: output, shape index: {0}]   ;;  %s1014_s6 = inlined_call_operand.hbm [shape: f32[2,14], index: 6, kind: output, shape index: {1}]  }
   0x1   :  { %v369_v0 = vld [vmem:[%s1011_s3] sm:$0x3]  ;;  %v30_v2 = vld [vmem:[%s1009_s1 + $0x8] sm:$0xff]  ;;  %756 = vset.pattern.permute.xlu0 %v809_v3  ;;  %v31_v5 = vld [vmem:[%s1009_s1 + $0x10] sm:$0xff] }
   0x2   :  { %v29_v1 = vld [vmem:[%s1009_s1] sm:$0xff]  ;;  %v32_v6 = vld [vmem:[%s1009_s1 + $0x18] sm:$0xff]  ;;  %371 = vperm.xlu0 %756, %v369_v0   ;;  %v623_v11 = vld [vmem:[%s1009_s1 + $0x28] sm:$0xff] }
   0x3   :  { %v726_v4 = vpack.c.bf16 %v30_v2, %v29_v1  ;;  %v24_v7 = vld [vmem:[%s1008_s0] sm:$0xff]  ;;  %v730_v8 = vpack.c.bf16 %v32_v6, %v31_v5  ;;  %v25_v12 = vld [vmem:[%s1008_s0 + $0x8] sm:$0xff]  ;;  %v624_v17 = vld [vmem:[%s1009_s1 + $0x30] sm:$0xff] }
   0x4   :  { %v44_v9 = vrot.slane %v24_v7, 1  ;;  %693 = vmatprep.mubr.msk.f32.mxu0 %vm53_vm0, %v24_v7  ;;  %v622_v10 = vld [vmem:[%s1009_s1 + $0x20] sm:$0xff]  ;;  %v635_v15 = vld [vmem:[%s1009_s1 + $0x48] sm:$0xff]  ;;  %v45_v16 = vrot.slane %v25_v12, 1  ;;  %v625_v18 = vld [vmem:[%s1009_s1 + $0x38] sm:$0xff] }
   0x5   :  { %727 = vmatprep.subr.bf16.mxu0 %v726_v4  ;;  %v718_v13 = vpack.c.bf16 %v623_v11, %v622_v10  ;;  %v634_v14 = vld [vmem:[%s1009_s1 + $0x40] sm:$0xff]  ;;  %v26_v20 = vld [vmem:[%s1008_s0 + $0x10] sm:$0xff]  ;;  %v722_v21 = vpack.c.bf16 %v625_v18, %v624_v17  ;;  %v27_v22 = vld [vmem:[%s1008_s0 + $0x18] sm:$0xff] }
   0x6   :  { %729 = vmatpush3.bf16.msra.mxu0 %v726_v4  ;;  %v734_v19 = vpack.c.bf16 %v635_v15, %v634_v14  ;;  %v46_v23 = vsel %vm43_vm1, %v44_v9, %v45_v16  ;;  %v47_v24 = vrot.slane %v26_v20, 1  ;;  %v636_v25 = vld [vmem:[%s1009_s1 + $0x50] sm:$0xff]  ;;  %v637_v26 = vld [vmem:[%s1009_s1 + $0x58] sm:$0xff] }
   0x7   :  { %731 = vmatprep.subr.bf16.mxu0 %v730_v8  ;;  %719 = vmatprep.subr.bf16.mxu1 %v718_v13 }
   0x8   :  { %721 = vmatpush3.bf16.msra.mxu1 %v718_v13  ;;  %679 = vmatprep.mubr.msk.f32.mxu1 %vm53_vm0, %v46_v23 }
   0x9   :  { %13 = vsyncpa [#allocation5], 0  ;;  %723 = vmatprep.subr.bf16.mxu1 %v722_v21  ;;  %v49_v27 = vrot.slane %v27_v22, 1  ;;  %v28_v28 = vld [vmem:[%s1008_s0 + $0x20] sm:$0xff]  ;;  %v246_v29 = vrot.slane %v24_v7, 2  ;;  %v247_v30 = vrot.slane %v25_v12, 2  ;;  %v738_v31 = vpack.c.bf16 %v637_v26, %v636_v25 }
   0xa   :  { %733 = vmatpush3.bf16.msra.mxu0 %v730_v8  ;;  %vm245_vm2 = vcmask 1045504   ;;  %v48_v32 = vsel %vm43_vm1, %v45_v16, %v47_v24  ;;  %v51_v33 = vrot.slane %v28_v28, 1  ;;  %v810_v34 = vmov 0.0   ;;  %v376_v35 = vld [vmem:[%s1012_s4] sm:$0xff] }
   0xb   :  { %735 = vmatprep.subr.bf16.mxu0 %v734_v19  ;;  %v50_v36 = vsel %vm43_vm1, %v47_v24, %v49_v27  ;;  %v249_v37 = vrot.slane %v26_v20, 2  ;;  %v251_v38 = vrot.slane %v27_v22, 2  ;;  %v248_v39 = vsel %vm245_vm2, %v246_v29, %v247_v30  ;;  %v642_v2 = vld [vmem:[%s1010_s2] ss:$0 sm:$0xff]  ;;  %s813_s2 = smov [#allocation4]  }
   0xc   :  { %725 = vmatpush3.bf16.msra.mxu1 %v722_v21  ;;  %v52_v40 = vsel %vm43_vm1, %v49_v27, %v51_v33  ;;  %v253_v42 = vrot.slane %v28_v28, 2  ;;  %vm811_vm3 = vmmov 0   ;;  %v367_v45 = vlaneseq  ;;  %s610_s8 = sshll.u32 %s813_s2, 4  ;;  %s611_s8 = int_to_ptr.vmem [resolvable:$true] %s610_s8 }
   0xd   :  { %694 = vmatmul.mubr.msk.f32.vlgmr.msra.gmra.mrb[0].mxu0 %vm53_vm0, %v25_v12  ;;  %713 = vmatprep.subr.mxu1 %v810_v34  ;;  %v250_v41 = vsel %vm245_vm2, %v247_v30, %v249_v37  ;;  %v252_v43 = vsel %vm245_vm2, %v249_v37, %v251_v38  ;;  %vm377_vm4 = vcmask 64512   ;;  %v812_v61 = vmov 1966171168   ;;  %s761_s9 = scalar_lea.vmem %s611_s8, 32  ;;  %p766_p1 = scmp.lt.s32.totalorder %s611_s8, %s611_s8 }
   0xe   :  { %737 = vmatpush3.bf16.msra.mxu0 %v734_v19  ;;  %696 = vmatprep.mubr.msk.f32.mxu0 %vm53_vm0, %v26_v20  ;;  %v254_v44 = vsel %vm245_vm2, %v251_v38, %v253_v42  ;;  %v927_v46 = vand.u32 127, %v367_v45  ;;  %v453_v62 = vunpack.c.l.s4 %v812_v61  ;;  %v930_v63 = vshrl.u32 %v367_v45, 7  ;;  %p762_p0 = scmp.ne.s32.totalorder %s611_s8, %s761_s9  ;;  %p767_p2 = scmp.lt.s32.totalorder %s761_s9, %s761_s9 }
   0xf   :  { %739 = vmatprep.subr.bf16.mxu0 %v738_v31  ;;  %680 = vmatmul.mubr.msk.f32.vlgmr.msra.gmra.mrb[0].mxu1 %vm53_vm0, %v48_v32  ;;  %vm488_vm6 = vcmask 130048   ;;  %vm515_vm7 = vcmask 130112   ;;  %vm526_vm8 = vcmask 1041409   ;;  %vm530_vm10 = vcmask 123904  }
  0x10   :  { %714 = vmatpush3.msra.mxu1 %v376_v35  ;;  %682 = vmatprep.mubr.msk.f32.mxu1 %vm53_vm0, %v50_v36  ;;  %v454_v0 = vunpack.c.0.s8 %v453_v62  ;;  %v476_v8 = vsub.s32 0, %v930_v63  ;;  %v510_v28 = vadd.s32 4294967288, %v927_v46  ;;  %vm501_vm9 = vcmp.lt.s32.totalorder %v927_v46, 14  ;;  %p768_p3 = por %p767_p2, %p766_p1 }
  0x11   :  { %697 = vmatmul.mubr.msk.f32.gmra.mrb[2].mxu0 %vm53_vm0, %v27_v22  ;;  %vm592_vm11 = vcmask 107520  }
  0x12   :  { %741 = vmatpush3.bf16.msra.mxu0 %v738_v31  ;;  %707 = vmatprep.mubr.msk.f32.mxu0 %vm53_vm0, %v248_v39  ;;  %v457_v1 = vsub.s32 %v454_v0, %v930_v63  ;;  %v513_v30 = vsub.s32 %v510_v28, %v930_v63  ;;  %v508_v31 = vsub.s32 %v927_v46, %v930_v63  ;;  %p769_p4 = pnand %p768_p3, %p762_p0 }
  0x13   :  { %683 = vmatmul.mubr.msk.f32.gmra.mrb[2].mxu1 %vm53_vm0, %v52_v40 }
  0x14   :  { %715 = vmatprep.mubr.msk.f32.mxu1 %vm811_vm3, %v810_v34 }
  0x15   :  { %708 = vmatmul.mubr.msk.f32.vlgmr.msra.gmra.mrb[0].mxu0 %vm53_vm0, %v250_v41 }
  0x16   :  { %710 = vmatprep.mubr.msk.f32.mxu0 %vm53_vm0, %v252_v43 }
  0x19   :  { %711 = vmatmul.mubr.msk.f32.gmra.mrb[2].mxu0 %vm53_vm0, %v254_v44 }
  0x81   :  { %v372_v47 = vpop.permute.xlu0 %371 }
  0x82   :  { %vm373_vm5 = vcmp.eq.s32.totalorder %v927_v46, %v372_v47 }
  0x83   :  { %v643_v48 = vsel %vm373_vm5, 1.0, %v810_v34 }
  0x84   :  { %716 = vmatmul.mubr.msk.f32.vlgmr.msra.gmra.mrb[4].mxu1 %vm377_vm4, %v643_v48 }
  0xe2   :  { %v681_v49 = vpop.f32.mrb[0].mxu1 }
  0xe3   :  { %v128_v50 = vpop.f32.mrb[1].mxu1 }
  0xe6   :  { %v684_v51 = vpop.f32.mrb[2].mxu1 }
  0xe7   :  { %v138_v52 = vpop.f32.mrb[3].mxu1 }
  0xe8   :  { %v709_v53 = vpop.f32.mrb[0].mxu0 }
  0xe9   :  { %v742_v54 = vadd.f32 %v709_v53, %v681_v49  ;;  %v329_v55 = vpop.f32.mrb[1].mxu0 }
  0xea   :  { %v743_v56 = vadd.f32 %v329_v55, %v128_v50 }
  0xeb   :  { %v936_v4 = vadd.f32 %v742_v54, %v642_v2  ;;  %v556_v54 = vsub.s32 1, %v930_v63 }
  0xec   :  { %v712_v57 = vpop.f32.mrb[2].mxu0  ;;  %v938_v5 = vadd.f32 %v743_v56, %v642_v2 }
  0xed   :  { %v744_v58 = vadd.f32 %v712_v57, %v684_v51  ;;  %v339_v59 = vpop.f32.mrb[3].mxu0  ;;  %v364_v12 = vmax.f32 %v936_v4, 0.0 }
  0xee   :  { %v745_v60 = vadd.f32 %v339_v59, %v138_v52  ;;  %v363_v13 = vmax.f32 %v938_v5, 0.0 }
  0xef   :  { %v945_v16 = vadd.f32 %v744_v58, %v642_v2 }
  0xf0   :  { %v941_v9 = vadd.f32 %v745_v60, %v642_v2 }
  0xf1   :  { %v366_v24 = vmax.f32 %v945_v16, 0.0 }
  0xf2   :  { %v365_v17 = vmax.f32 %v941_v9, 0.0 }
 0x157   :  { %v447_v3 = vpop.f32.mrb[4].mxu1 }
 0x158   :  { %v458_v6 = vrot.slane %v447_v3, %v457_v1  ;;  %v717_v7 = vpop.f32.mrb[5].mxu1 }
 0x15a   :  { %v459_v10 = vcombine.high %v458_v6, %v458_v6  ;;  %v466_v11 = vrot.slane %v458_v6, %v457_v1 }
 0x15c   :  { %v473_v14 = vrot.slane %v459_v10, %v457_v1  ;;  %v477_v15 = vrot.slane %v466_v11, %v476_v8 }
 0x15e   :  { %v485_v18 = vmul.f32 %v477_v15, %v364_v12  ;;  %v484_v19 = vmul.f32 %v477_v15, %v363_v13  ;;  %v481_v20 = vrot.slane %v473_v14, %v476_v8 }
 0x160   :  { %v492_v21 = vsel %vm488_vm6, %v485_v18, 0.0  ;;  %v489_v22 = vsel %vm488_vm6, %v484_v19, 0.0  ;;  %v486_v23 = vmul.f32 %v481_v20, %v365_v17  ;;  %v487_v26 = vmul.f32 %v481_v20, %v366_v24 }
 0x161   :  { %493 = vadd.xlane.f32.xlu1 %v492_v21  ;;  %490 = vadd.xlane.f32.xlu0 %v489_v22 }
 0x162   :  { %v495_v25 = vsel %vm488_vm6, %v486_v23, 0.0  ;;  %v498_v27 = vsel %vm488_vm6, %v487_v26, 0.0 }
 0x165   :  { %496 = vadd.xlane.f32.xlu1 %v495_v25 }
 0x169   :  { %499 = vadd.xlane.f32.xlu1 %v498_v27 }
 0x1ee   :  { %v494_v29 = vpop.xlane.xlu1 %493  ;;  %v491_v32 = vpop.xlane.xlu0 %490 }
 0x1ef   :  { %v514_v34 = vrot.slane %v494_v29, %v513_v30  ;;  %v509_v35 = vrot.slane %v491_v32, %v508_v31 }
 0x1f1   :  { %v516_v39 = vsel %vm515_vm7, %v514_v34, %v509_v35 }
 0x1f2   :  { %v497_v33 = vpop.xlane.xlu1 %496 }
 0x1f3   :  { %v520_v37 = vrot.slane %v497_v33, %v508_v31 }
 0x1f6   :  { %v500_v36 = vpop.xlane.xlu1 %499 }
 0x1f7   :  { %v524_v38 = vrot.slane %v500_v36, %v513_v30 }
 0x1f9   :  { %v525_v40 = vsel %vm515_vm7, %v524_v38, %v520_v37 }
 0x1fa   :  { %v527_v41 = vsel %vm526_vm8, %v525_v40, %v516_v39 }
 0x1fb   :  { %v529_v42 = vsel %vm501_vm9, %v527_v41, -1e+30 }
 0x1fc   :  { %v531_v43 = vsel %vm530_vm10, %v529_v42, -inf }
 0x1fd   :  { %532 = vmax.xlane.f32.xlu1 %v531_v43 }
 0x28a   :  { %v533_v44 = vpop.xlane.xlu1 %532 }
 0x28b   :  { %v534_v45 = vsub.f32 %v529_v42, %v533_v44 }
 0x28d   :  { %v535_v47 = vmul.f32 1.442695, %v534_v45 }
 0x28f   :  { %757 = vpow2.f32 %v535_v47 }
 0x299   :  { %v758_v48 = vpop.eup %757 }
 0x29a   :  { %v537_v49 = vsel %vm501_vm9, %v758_v48, 0.0 }
 0x29b   :  { %v538_v50 = vsel %vm530_vm10, %v537_v49, 0.0 }
 0x29c   :  { %539 = vadd.xlane.f32.xlu1 %v538_v50 }
 0x329   :  { %v540_v51 = vpop.xlane.xlu1 %539 }
 0x32a   :  { %759 = vrcp.f32 %v540_v51 }
 0x334   :  { %v760_v46 = vpop.eup %759 }
 0x335   :  { %v542_v52 = vmul.f32 %v760_v46, %v537_v49 }
 0x337   :  { %v546_v53 = vrot.slane %v542_v52, %v476_v8  ;;  %593 = vst.msk [vmem:[#allocation4] sm:$0x3] %vm592_vm11, %v542_v52  ;;  %v557_v55 = vrot.slane %v542_v52, %v556_v54 }
 0x339   :  { %552 = vbcast.lane.b32.xlu0 %v546_v53, 264  ;;  %548 = vbcast.lane.b32.xlu1 %v546_v53, 256 }
 0x33d   :  { %559 = vbcast.lane.b32.xlu1 %v557_v55, 256 }
 0x341   :  { %563 = vbcast.lane.b32.xlu1 %v557_v55, 264 }
 0x342   :  { %772 = shalt.err (!%p769_p4)
}
 0x343   :  { %s773_s12 = scalar_lea.hbm %s1014_s6, 32 }
 0x344   :  { %p774_p5 = scmp.ne.s32.totalorder %s1014_s6, %s773_s12  ;;  %p777_p6 = scmp.lt.u32.totalorder %s773_s12, %s1014_s6 }
 0x346   :  { %p779_p7 = pnand %p777_p6, %p774_p5 }
 0x348   :  { %782 = shalt.err (!%p779_p7)
}
 0x349   :  { %613 = dma.vmem_to_hbm [thread:$0]  %s611_s8, 32, %s1014_s6, [#allocation5]  }
 0x34a   :  { %s814_s6 = smov [#allocation2]  }
 0x34b   :  { %s600_s19 = sshll.u32 %s814_s6, 4  ;;  %s601_s19 = int_to_ptr.vmem [resolvable:$true] %s600_s19 }
 0x34c   :  { %s783_s20 = scalar_lea.vmem %s601_s19, 32  ;;  %p788_p9 = scmp.lt.s32.totalorder %s601_s19, %s601_s19 }
 0x34d   :  { %p784_p8 = scmp.ne.s32.totalorder %s601_s19, %s783_s20  ;;  %p789_p10 = scmp.lt.s32.totalorder %s783_s20, %s783_s20 }
 0x34f   :  { %p790_p11 = por %p789_p10, %p788_p9 }
 0x351   :  { %p791_p12 = pnand %p790_p11, %p784_p8 }
 0x3ab   :  { %v553_v56 = vpop.permute.xlu0 %552  ;;  %v549_v57 = vpop.permute.xlu1 %548 }
 0x3ac   :  { %v566_v58 = vmul.f32 %v553_v56, %v364_v12  ;;  %v565_v59 = vmul.f32 %v549_v57, %v363_v13 }
 0x3ae   :  { %v570_v60 = vsel %vm488_vm6, %v566_v58, 0.0  ;;  %v569_v61 = vsel %vm488_vm6, %v565_v59, 0.0 }
 0x3af   :  { %v571_v62 = vadd.f32 %v570_v60, %v569_v61  ;;  %v560_v63 = vpop.permute.xlu1 %559 }
 0x3b0   :  { %v567_v1 = vmul.f32 %v560_v63, %v365_v17 }
 0x3b1   :  { %v572_v0 = vrot.slane %v571_v62, 4 }
 0x3b2   :  { %v578_v4 = vsel %vm488_vm6, %v567_v1, 0.0 }
 0x3b3   :  { %v573_v2 = vadd.f32 %v572_v0, %v571_v62  ;;  %v564_v3 = vpop.permute.xlu1 %563 }
 0x3b4   :  { %v568_v6 = vmul.f32 %v564_v3, %v366_v24 }
 0x3b5   :  { %v574_v7 = vrot.slane %v573_v2, 2 }
 0x3b6   :  { %v579_v5 = vsel %vm488_vm6, %v568_v6, 0.0 }
 0x3b7   :  { %v580_v8 = vadd.f32 %v579_v5, %v578_v4  ;;  %v575_v11 = vadd.f32 %v574_v7, %v573_v2 }
 0x3b9   :  { %v581_v10 = vrot.slane %v580_v8, 4  ;;  %v576_v15 = vrot.slane %v575_v11, 1 }
 0x3bb   :  { %v582_v12 = vadd.f32 %v581_v10, %v580_v8  ;;  %v577_v9 = vadd.f32 %v576_v15, %v575_v11 }
 0x3bd   :  { %v583_v13 = vrot.slane %v582_v12, 2 }
 0x3bf   :  { %v584_v14 = vadd.f32 %v583_v13, %v582_v12 }
 0x3c1   :  { %v585_v18 = vrot.slane %v584_v14, 1 }
 0x3c3   :  { %v586_v17 = vadd.f32 %v585_v18, %v584_v14 }
 0x3c5   :  { %v589_v16 = vsel %vm526_vm8, %v586_v17, %v577_v9 }
 0x3c6   :  { %591 = vst.msk [vmem:[#allocation2] sm:$0x3] %vm530_vm10, %v589_v16 }
 0x3c7   :  { %794 = shalt.err (!%p791_p12)
}
 0x3c8   :  { %s795_s23 = scalar_lea.hbm %s1013_s5, 32 }
 0x3c9   :  { %p796_p13 = scmp.ne.s32.totalorder %s1013_s5, %s795_s23  ;;  %p799_p0 = scmp.lt.u32.totalorder %s795_s23, %s1013_s5 }
 0x3cb   :  { %p801_p1 = pnand %p799_p0, %p796_p13 }
 0x3cd   :  { %804 = shalt.err (!%p801_p1)
}
 0x3ce   :  { %603 = dma.vmem_to_hbm [thread:$0]  %s601_s19, 32, %s1013_s5, [#allocation3]  }
 0x3cf   :  { %805 = dma.done.wait [#allocation3], 32  }
 0x3d0   :  { %806 = vsyncadd [#allocation3], 4294967264 }
 0x3d1   :  { %807 = dma.done.wait [#allocation5], 32  }
 0x3d2   :  { %808 = vsyncadd [#allocation5], 4294967264 }
 0x3d3   :  { %620 = vsyncpa [#allocation3], 1 }
 0x3d4   :  { %621 = vsyncpa [#allocation5], 1 }

</bundles_post_ra>
